<compile_context>
chip_gen: v6e
topology: v6e:2x2x1
jax: 0.10.0
libtpu: 0.0.40
codegen_flags: <defaults>
</compile_context>

<pallas_src>
import jax
import jax.numpy as jnp
from jax import lax
from jax.experimental import pallas as pl
from jax.experimental.pallas import tpu as pltpu

_LANE = 128
_SUBLANE = 8


def _round_up(x, m):
    return ((x + m - 1) // m) * m


def _pick_tile(dim, cap, align):
    """Largest tile <= cap that is a multiple of `align` and divides `dim`.

    Falls back to the full dimension (a full-extent block is always legal,
    even if unaligned)."""
    if dim <= cap:
        return dim
    t = (cap // align) * align
    while t >= align:
        if dim % t == 0:
            return t
        t -= align
    return dim


def _iclassifier_kernel(x_ref, w_ref, b_ref, c_ref, acc_ref):
    # x_ref:   (tm, tk)   activation tile
    # w_ref:   (Cp, tk)   weight tile (untransposed; contract along dim 1)
    # b_ref:   (1, Cp)    bias (f32)
    # c_ref:   (tm, Cp)   logits tile (lane-dense, padded Cout)
    # acc_ref: (tm, Cp)   f32 accumulator, resident across the K grid axis
    k = pl.program_id(1)

    @pl.when(k == 0)
    def _():
        acc_ref[...] = jnp.zeros_like(acc_ref)

    acc_ref[...] += lax.dot_general(
        x_ref[...], w_ref[...],
        dimension_numbers=(((1,), (1,)), ((), ())),
        preferred_element_type=jnp.float32,
    )

    @pl.when(k == pl.num_programs(1) - 1)
    def _():
        c_ref[...] = (acc_ref[...] + b_ref[...]).astype(c_ref.dtype)


def iclassifier_forward(feats, weight, bias, *, tm_cap=256, tk_cap=2048):
    """IClassifier.forward.

    feats:  (N, ...) arbitrary trailing dims (flattened row-major, like .view)
    weight: (Cout, F) nn.Linear weight
    bias:   (Cout,)
    Returns (flat, logits) matching the PyTorch module.
    """
    n = feats.shape[0]
    flat = feats.reshape(n, -1)          # metadata-only; returned as-is
    f = flat.shape[1]
    cout = weight.shape[0]

    # Lane-dense logits: pad Cout up to a multiple of 128, slice afterwards.
    cp = _round_up(cout, _LANE)
    if cp == cout:
        w_pad = weight
        b_pad = bias.astype(jnp.float32).reshape(1, cout)
    else:
        w_pad = jnp.zeros((cp, f), dtype=weight.dtype).at[:cout, :].set(weight)
        b_pad = jnp.zeros((1, cp), dtype=jnp.float32).at[0, :cout].set(
            bias.astype(jnp.float32))

    tm = _pick_tile(n, tm_cap, _SUBLANE)
    tk = _pick_tile(f, tk_cap, _LANE)
    grid = (n // tm, f // tk)

    # Per-step VMEM budget (double-buffered inputs/output + accumulator).
    itemsize = jnp.dtype(flat.dtype).itemsize
    vmem_bytes = (2 * (tm * tk + cp * tk) * itemsize   # pipelined input tiles
                  + 2 * tm * cp * itemsize             # pipelined output tile
                  + tm * cp * 4                        # f32 accumulator
                  + 2 * cp * 4)                        # bias
    vmem_limit = min(max(2 * vmem_bytes, 16 * 1024 * 1024), 48 * 1024 * 1024)

    cost = pl.CostEstimate(
        flops=2 * n * f * cp,
        transcendentals=0,
        bytes_accessed=(n * f + cp * f + n * cp) * itemsize,
    )

    c_pad = pl.pallas_call(
        _iclassifier_kernel,
        out_shape=jax.ShapeDtypeStruct((n, cp), flat.dtype),
        grid_spec=pltpu.PrefetchScalarGridSpec(
            num_scalar_prefetch=0,
            grid=grid,
            in_specs=[
                pl.BlockSpec((tm, tk), lambda i, k: (i, k)),
                pl.BlockSpec((cp, tk), lambda i, k: (0, k)),
                pl.BlockSpec((1, cp), lambda i, k: (0, 0)),
            ],
            out_specs=pl.BlockSpec((tm, cp), lambda i, k: (i, 0)),
            scratch_shapes=[pltpu.VMEM((tm, cp), jnp.float32)],
        ),
        compiler_params=pltpu.CompilerParams(
            dimension_semantics=("parallel", "arbitrary"),
            vmem_limit_bytes=vmem_limit,
        ),
        cost_estimate=cost,
    )(flat, w_pad, b_pad)

    c = c_pad[:, :cout] if cp != cout else c_pad
    return flat, c


if __name__ == "__main__":
    key = jax.random.PRNGKey(0)
    k_x, k_w, k_b = jax.random.split(key, 3)

    # Small shapes consistent with the forward: feats (N, C, H, W) flattened.
    N, C, H, W = 2, 4, 16, 16
    feature_size = C * H * W        # 1024
    output_class = 8

    feats = jax.random.normal(k_x, (N, C, H, W), dtype=jnp.float32)

    # Deterministic nn.Linear-style init: U(-1/sqrt(F), 1/sqrt(F))
    bound = 1.0 / (feature_size ** 0.5)
    weight = jax.random.uniform(k_w, (output_class, feature_size),
                                minval=-bound, maxval=bound, dtype=jnp.float32)
    bias = jax.random.uniform(k_b, (output_class,),
                              minval=-bound, maxval=bound, dtype=jnp.float32)

    flat_out, c = iclassifier_forward(feats, weight, bias)
    jax.block_until_ready((flat_out, c))

    # Reference check in plain JAX.
    flat_ref = feats.reshape(N, -1)
    c_ref = flat_ref @ weight.T + bias
    assert flat_out.shape == (N, feature_size)
    assert c.shape == (N, output_class)
    assert jnp.allclose(flat_out, flat_ref, atol=1e-6)
    assert jnp.allclose(c, c_ref, atol=1e-4)

    print("KERNEL_OK")
</pallas_src>

<mosaic_0001>
module attributes {stable_mosaic.version = 11 : i64} {
  func.func @_iclassifier_kernel(%arg0: i32, %arg1: i32, %arg2: memref<2x1024xf32, #tpu.memory_space<vmem>>, %arg3: memref<128x1024xf32, #tpu.memory_space<vmem>>, %arg4: memref<1x128xf32, #tpu.memory_space<vmem>>, %arg5: memref<2x128xf32, #tpu.memory_space<vmem>>, %arg6: memref<2x128xf32, #tpu.memory_space<vmem>>) attributes {dimension_semantics = [#tpu.dimension_semantics<parallel>, #tpu.dimension_semantics<arbitrary>], iteration_bounds = array<i64: 1, 1>, scalar_prefetch = 0 : i64, scratch_operands = 1 : i64, tpu.core_type = #tpu.core_type<tc>, window_params = [{transform_indices = @transform_0, window_bounds = array<i64: 2, 1024>}, {transform_indices = @transform_1, window_bounds = array<i64: 128, 1024>}, {pipeline_mode = #tpu.pipeline_mode<synchronous>, transform_indices = @transform_2, window_bounds = array<i64: 1, 128>}, {transform_indices = @transform_3, window_bounds = array<i64: 2, 128>}]} {
    %c0_i32 = arith.constant 0 : i32
    %0 = arith.cmpi eq, %arg1, %c0_i32 : i32
    %1 = arith.extui %0 : i1 to i32
    %c0_i32_0 = arith.constant 0 : i32
    %2 = arith.cmpi ne, %1, %c0_i32_0 : i32
    scf.if %2 {
      %cst_10 = arith.constant 0.000000e+00 : f32
      %12 = vector.broadcast %cst_10 : f32 to vector<2x128xf32>
      %c0_11 = arith.constant 0 : index
      %c0_12 = arith.constant 0 : index
      %13 = vector.load %arg6[%c0_11, %c0_12] : memref<2x128xf32, #tpu.memory_space<vmem>>, vector<2x128xf32>
      tpu.vector_store %arg6[%c0_11, %c0_12], %12 {strides = array<i32>} : memref<2x128xf32, #tpu.memory_space<vmem>>, vector<2x128xf32>,
    } else {
    }
    %c0 = arith.constant 0 : index
    %c0_1 = arith.constant 0 : index
    %3 = vector.load %arg6[%c0, %c0_1] : memref<2x128xf32, #tpu.memory_space<vmem>>, vector<2x128xf32>
    %c0_2 = arith.constant 0 : index
    %c0_3 = arith.constant 0 : index
    %4 = vector.load %arg2[%c0_2, %c0_3] : memref<2x1024xf32, #tpu.memory_space<vmem>>, vector<2x1024xf32>
    %c0_4 = arith.constant 0 : index
    %c0_5 = arith.constant 0 : index
    %5 = vector.load %arg3[%c0_4, %c0_5] : memref<128x1024xf32, #tpu.memory_space<vmem>>, vector<128x1024xf32>
    %cst = arith.constant dense<0.000000e+00> : vector<2x128xf32>
    %6 = tpu.matmul %4, %5, %cst {dimension_numbers = #tpu.dot_dimension_numbers<[1], [1], [0], [0], [0, 0, 1, 0], [], []>} : vector<2x1024xf32>, vector<128x1024xf32>, vector<2x128xf32> -> vector<2x128xf32>
    %7 = arith.addf %3, %6 : vector<2x128xf32>
    %c0_6 = arith.constant 0 : index
    %c0_7 = arith.constant 0 : index
    %8 = vector.load %arg6[%c0_6, %c0_7] : memref<2x128xf32, #tpu.memory_space<vmem>>, vector<2x128xf32>
    tpu.vector_store %arg6[%c0_6, %c0_7], %7 {strides = array<i32>} : memref<2x128xf32, #tpu.memory_space<vmem>>, vector<2x128xf32>,
    %c0_i32_8 = arith.constant 0 : i32
    %9 = arith.cmpi eq, %arg1, %c0_i32_8 : i32
    %10 = arith.extui %9 : i1 to i32
    %c0_i32_9 = arith.constant 0 : i32
    %11 = arith.cmpi ne, %10, %c0_i32_9 : i32
    scf.if %11 {
      %c0_10 = arith.constant 0 : index
      %c0_11 = arith.constant 0 : index
      %12 = vector.load %arg6[%c0_10, %c0_11] : memref<2x128xf32, #tpu.memory_space<vmem>>, vector<2x128xf32>
      %c0_12 = arith.constant 0 : index
      %c0_13 = arith.constant 0 : index
      %13 = vector.load %arg4[%c0_12, %c0_13] : memref<1x128xf32, #tpu.memory_space<vmem>>, vector<1x128xf32>
      %14 = vector.broadcast %13 : vector<1x128xf32> to vector<2x128xf32>
      %15 = arith.addf %12, %14 : vector<2x128xf32>
      %c0_14 = arith.constant 0 : index
      %c0_15 = arith.constant 0 : index
      %16 = vector.load %arg5[%c0_14, %c0_15] : memref<2x128xf32, #tpu.memory_space<vmem>>, vector<2x128xf32>
      tpu.vector_store %arg5[%c0_14, %c0_15], %15 {strides = array<i32>} : memref<2x128xf32, #tpu.memory_space<vmem>>, vector<2x128xf32>,
    } else {
    }
    return
  }
  func.func @transform_0(%arg0: i32, %arg1: i32) -> (i32, i32) {
    %c0_i32 = arith.constant 0 : i32
    return %arg0, %arg1 : i32, i32
  }
  func.func @transform_1(%arg0: i32, %arg1: i32) -> (i32, i32) {
    %c0_i32 = arith.constant 0 : i32
    %c0_i32_0 = arith.constant 0 : i32
    return %c0_i32, %arg1 : i32, i32
  }
  func.func @transform_2(%arg0: i32, %arg1: i32) -> (i32, i32) {
    %c0_i32 = arith.constant 0 : i32
    %c0_i32_0 = arith.constant 0 : i32
    %c0_i32_1 = arith.constant 0 : i32
    return %c0_i32, %c0_i32_0 : i32, i32
  }
  func.func @transform_3(%arg0: i32, %arg1: i32) -> (i32, i32) {
    %c0_i32 = arith.constant 0 : i32
    %c0_i32_0 = arith.constant 0 : i32
    return %arg0, %c0_i32 : i32, i32
  }
}

</mosaic_0001>

<bundles_post_ra>
// kernel: tpu_custom_call.1
= control target key start
LH: loop header
LB: loop body
LE: loop exit
PB: predicated region body
PF: predicated region fallthrough
CT: control target
= control target key end

     0   :  { %8 = vsyncpa [#allocation4], 0  ;;  %s673_s0 = inlined_call_operand.hbm [shape: f32[2,1024], index: 0, kind: input, shape index: {}]   ;;  %s674_s1 = inlined_call_operand.hbm [shape: f32[128,1024], index: 1, kind: input, shape index: {}]   ;;  %s675_s2 = inlined_call_operand.vmem [shape: f32[1,128], index: 2, kind: input, shape index: {}]   ;;  %s676_s3 = inlined_call_operand.hbm [shape: f32[2,128], index: 3, kind: output, shape index: {}]  }
   0x1   :  { %9 = vsyncpa [#allocation7], 0 }
   0x2   :  { %10 = vsyncpa [#allocation5], 0  ;;  %s608_s12 = smov [#allocation3]   ;;  %s609_s14 = smov [#allocation6]  }
   0x3   :  { %s17_s13 = sshll.u32 %s608_s12, 4  ;;  %s26_s15 = sshll.u32 %s609_s14, 4  ;;  %s18_s13 = int_to_ptr.vmem [resolvable:$true] %s17_s13  ;;  %s27_s15 = int_to_ptr.vmem [resolvable:$true] %s26_s15 }
   0x4   :  { %s550_s16 = scalar_lea.vmem %s18_s13, 256  ;;  %p555_p1 = scmp.lt.s32.totalorder %s18_s13, %s18_s13 }
   0x5   :  { %p551_p0 = scmp.ne.s32.totalorder %s18_s13, %s550_s16  ;;  %p556_p2 = scmp.lt.s32.totalorder %s550_s16, %s550_s16 }
   0x7   :  { %p557_p3 = por %p556_p2, %p555_p1 }
   0x9   :  { %p558_p4 = pnand %p557_p3, %p551_p0 }
   0xb   :  { %561 = shalt.err (!%p558_p4)
}
   0xc   :  { %20 = dma.hbm_to_vmem [thread:$0]  %s673_s0, 256, %s18_s13, [#allocation4]  }
   0xd   :  { %s570_s19 = scalar_lea.vmem %s27_s15, 16384  ;;  %p575_p6 = scmp.lt.s32.totalorder %s27_s15, %s27_s15 }
   0xe   :  { %p571_p5 = scmp.ne.s32.totalorder %s27_s15, %s570_s19  ;;  %p576_p7 = scmp.lt.s32.totalorder %s570_s19, %s570_s19 }
  0x10   :  { %p577_p8 = por %p576_p7, %p575_p6 }
  0x12   :  { %p578_p9 = pnand %p577_p8, %p571_p5 }
  0x14   :  { %581 = shalt.err (!%p578_p9)
}
  0x15   :  { %s610_s20 = smov 1024   ;;  %s611_s21 = smov 64  }
  0x16   :  { %32 = dma.hbm_to_vmem [thread:$0]  %s674_s1, 16384, %s27_s15, [#allocation7], %s610_s20, %s610_s20, %s611_s21  }
  0x17   :  { %602 = dma.done.wait [#allocation4], 256  }
  0x18   :  { %603 = vsyncadd [#allocation4], 4294967040 }
  0x19   :  { %604 = dma.done.wait [#allocation7], 16384  }
  0x1a   :  { %605 = vsyncadd [#allocation7], 4294950912  ;;  %v170_v0 = vld [vmem:[#allocation6 + $0x3c8] sm:$0xff]  ;;  %v172_v1 = vld [vmem:[#allocation6 + $0x3d8] sm:$0xff]  ;;  %v612_v14 = vmov 1983009808   ;;  %v183_v16 = vlaneseq }
  0x1b   :  { %v169_v2 = vld [vmem:[#allocation6 + $0x3c0] sm:$0xff]  ;;  %221 = vmatprep.subr.mxu0 %v170_v0  ;;  %291 = vmatprep.subr.mxu1 %v172_v1  ;;  %v171_v3 = vld [vmem:[#allocation6 + $0x3d0] sm:$0xff]  ;;  %v162_v4 = vld [vmem:[#allocation6 + $0x388] sm:$0xff]  ;;  %v181_v15 = vunpack.c.l.s4 %v612_v14  ;;  %s614_s24 = smov [#allocation8]  }
  0x1c   :  { %v164_v5 = vld [vmem:[#allocation6 + $0x398] sm:$0xff]  ;;  %222 = vmatpush1.xpose.msra.mxu0 %v169_v2  ;;  %292 = vmatpush1.xpose.msra.mxu1 %v171_v3  ;;  %v161_v6 = vld [vmem:[#allocation6 + $0x380] sm:$0xff]  ;;  %v163_v7 = vld [vmem:[#allocation6 + $0x390] sm:$0xff]  ;;  %v184_v22 = vshrl.u32 %v183_v16, 7  ;;  %s522_s25 = sshll.u32 %s614_s24, 4  ;;  %s523_s25 = int_to_ptr.vmem [resolvable:$true] %s522_s25 }
  0x1d   :  { %223 = vmatprep.subr.mxu0 %v162_v4  ;;  %293 = vmatprep.subr.mxu1 %v164_v5  ;;  %v154_v8 = vld [vmem:[#allocation6 + $0x348] sm:$0xff]  ;;  %v156_v9 = vld [vmem:[#allocation6 + $0x358] sm:$0xff]  ;;  %v153_v10 = vld [vmem:[#allocation6 + $0x340] sm:$0xff]  ;;  %v182_v21 = vunpack.c.0.s8 %v181_v15  ;;  %s582_s26 = scalar_lea.vmem %s523_s25, 32  ;;  %p587_p11 = scmp.lt.s32.totalorder %s523_s25, %s523_s25 }
  0x1e   :  { %v155_v11 = vld [vmem:[#allocation6 + $0x350] sm:$0xff]  ;;  %v146_v12 = vld [vmem:[#allocation6 + $0x308] sm:$0xff]  ;;  %v148_v13 = vld [vmem:[#allocation6 + $0x318] sm:$0xff]  ;;  %p583_p10 = scmp.ne.s32.totalorder %s523_s25, %s582_s26  ;;  %p588_p12 = scmp.lt.s32.totalorder %s582_s26, %s582_s26 }
  0x1f   :  { %v145_v17 = vld [vmem:[#allocation6 + $0x300] sm:$0xff]  ;;  %v147_v18 = vld [vmem:[#allocation6 + $0x310] sm:$0xff]  ;;  %v138_v19 = vld [vmem:[#allocation6 + $0x2c8] sm:$0xff]  ;;  %v641_v27 = vsub.s32 %v182_v21, %v184_v22 }
  0x20   :  { %224 = vmatpush1.xpose.msra.mxu0 %v161_v6  ;;  %294 = vmatpush1.xpose.msra.mxu1 %v163_v7  ;;  %v140_v20 = vld [vmem:[#allocation6 + $0x2d8] sm:$0xff]  ;;  %v137_v23 = vld [vmem:[#allocation6 + $0x2c0] sm:$0xff]  ;;  %v139_v24 = vld [vmem:[#allocation6 + $0x2d0] sm:$0xff]  ;;  %p589_p13 = por %p588_p12, %p587_p11 }
  0x21   :  { %225 = vmatprep.subr.mxu0 %v154_v8  ;;  %295 = vmatprep.subr.mxu1 %v156_v9  ;;  %v130_v25 = vld [vmem:[#allocation6 + $0x288] sm:$0xff]  ;;  %v132_v26 = vld [vmem:[#allocation6 + $0x298] sm:$0xff]  ;;  %v129_v28 = vld [vmem:[#allocation6 + $0x280] sm:$0xff] }
  0x22   :  { %v131_v29 = vld [vmem:[#allocation6 + $0x290] sm:$0xff]  ;;  %v122_v30 = vld [vmem:[#allocation6 + $0x248] sm:$0xff]  ;;  %v124_v31 = vld [vmem:[#allocation6 + $0x258] sm:$0xff]  ;;  %p590_p0 = pnand %p589_p13, %p583_p10 }
  0x23   :  { %v47_v32 = vld [vmem:[#allocation3] sm:$0xff]  ;;  %v121_v35 = vld [vmem:[#allocation6 + $0x240] sm:$0xff]  ;;  %v114_v37 = vld [vmem:[#allocation6 + $0x208] sm:$0xff] }
  0x24   :  { %226 = vmatpush1.xpose.msra.mxu0 %v153_v10  ;;  %296 = vmatpush1.xpose.msra.mxu1 %v155_v11  ;;  %v644_v33 = vrot.slane %v47_v32, %v641_v27  ;;  %v179_v34 = vcombine.high %v47_v32, %v47_v32  ;;  %v123_v36 = vld [vmem:[#allocation6 + $0x250] sm:$0xff]  ;;  %v116_v38 = vld [vmem:[#allocation6 + $0x218] sm:$0xff]  ;;  %v113_v42 = vld [vmem:[#allocation6 + $0x200] sm:$0xff] }
  0x25   :  { %227 = vmatprep.subr.mxu0 %v146_v12  ;;  %297 = vmatprep.subr.mxu1 %v148_v13  ;;  %v115_v43 = vld [vmem:[#allocation6 + $0x210] sm:$0xff]  ;;  %v106_v44 = vld [vmem:[#allocation6 + $0x1c8] sm:$0xff]  ;;  %v108_v45 = vld [vmem:[#allocation6 + $0x1d8] sm:$0xff] }
  0x26   :  { %v194_v39 = vcombine.high %v644_v33, %v644_v33  ;;  %v649_v40 = vrot.slane %v179_v34, %v641_v27  ;;  %v105_v46 = vld [vmem:[#allocation6 + $0x1c0] sm:$0xff]  ;;  %v107_v47 = vld [vmem:[#allocation6 + $0x1d0] sm:$0xff]  ;;  %v98_v48 = vld [vmem:[#allocation6 + $0x188] sm:$0xff] }
  0x27   :  { %v100_v49 = vld [vmem:[#allocation6 + $0x198] sm:$0xff]  ;;  %v97_v50 = vld [vmem:[#allocation6 + $0x180] sm:$0xff]  ;;  %v99_v51 = vld [vmem:[#allocation6 + $0x190] sm:$0xff] }
  0x28   :  { %228 = vmatpush1.xpose.msra.mxu0 %v145_v17  ;;  %298 = vmatpush1.xpose.msra.mxu1 %v147_v18  ;;  %v195_v41 = vcombine.high %v649_v40, %v649_v40  ;;  %v90_v52 = vld [vmem:[#allocation6 + $0x148] sm:$0xff]  ;;  %v92_v53 = vld [vmem:[#allocation6 + $0x158] sm:$0xff]  ;;  %v89_v54 = vld [vmem:[#allocation6 + $0x140] sm:$0xff] }
  0x29   :  { %229 = vmatprep.subr.mxu0 %v138_v19  ;;  %299 = vmatprep.subr.mxu1 %v140_v20  ;;  %v91_v55 = vld [vmem:[#allocation6 + $0x150] sm:$0xff]  ;;  %v82_v56 = vld [vmem:[#allocation6 + $0x108] sm:$0xff]  ;;  %v84_v57 = vld [vmem:[#allocation6 + $0x118] sm:$0xff] }
  0x2a   :  { %285 = vmatprep.mubr.f32.mxu0 %v194_v39  ;;  %355 = vmatprep.mubr.f32.mxu1 %v195_v41  ;;  %v81_v58 = vld [vmem:[#allocation6 + $0x100] sm:$0xff]  ;;  %v83_v59 = vld [vmem:[#allocation6 + $0x110] sm:$0xff]  ;;  %v74_v60 = vld [vmem:[#allocation6 + $0xc8] sm:$0xff] }
  0x2b   :  { %v76_v61 = vld [vmem:[#allocation6 + $0xd8] sm:$0xff]  ;;  %v73_v62 = vld [vmem:[#allocation6 + $0xc0] sm:$0xff]  ;;  %v75_v63 = vld [vmem:[#allocation6 + $0xd0] sm:$0xff] }
  0x2c   :  { %230 = vmatpush1.xpose.msra.mxu0 %v137_v23  ;;  %300 = vmatpush1.xpose.msra.mxu1 %v139_v24  ;;  %v66_v0 = vld [vmem:[#allocation6 + $0x88] sm:$0xff]  ;;  %v68_v1 = vld [vmem:[#allocation6 + $0x98] sm:$0xff]  ;;  %v65_v2 = vld [vmem:[#allocation6 + $0x80] sm:$0xff] }
  0x2d   :  { %231 = vmatprep.subr.mxu0 %v130_v25  ;;  %301 = vmatprep.subr.mxu1 %v132_v26  ;;  %v67_v3 = vld [vmem:[#allocation6 + $0x90] sm:$0xff]  ;;  %v58_v4 = vld [vmem:[#allocation6 + $0x48] sm:$0xff]  ;;  %v60_v5 = vld [vmem:[#allocation6 + $0x58] sm:$0xff] }
  0x2e   :  { %v48_v6 = vld [vmem:[#allocation3 + $0x8] sm:$0xff]  ;;  %v57_v7 = vld [vmem:[#allocation6 + $0x40] sm:$0xff]  ;;  %v59_v8 = vld [vmem:[#allocation6 + $0x50] sm:$0xff] }
  0x2f   :  { %v50_v9 = vld [vmem:[#allocation6 + $0x8] sm:$0xff]  ;;  %v52_v10 = vld [vmem:[#allocation6 + $0x18] sm:$0xff]  ;;  %v196_v11 = vcombine.high %v48_v6, %v48_v6  ;;  %v49_v12 = vld [vmem:[#allocation6] sm:$0xff]  ;;  %v654_v16 = vrot.slane %v48_v6, %v641_v27 }
  0x30   :  { %232 = vmatpush1.xpose.msra.mxu0 %v129_v28  ;;  %302 = vmatpush1.xpose.msra.mxu1 %v131_v29  ;;  %v51_v13 = vld [vmem:[#allocation6 + $0x10] sm:$0xff]  ;;  %v174_v14 = vld [vmem:[#allocation6 + $0x3e8] sm:$0xff]  ;;  %v176_v15 = vld [vmem:[#allocation6 + $0x3f8] sm:$0xff] }
  0x31   :  { %233 = vmatprep.subr.mxu0 %v122_v30  ;;  %303 = vmatprep.subr.mxu1 %v124_v31  ;;  %v657_v17 = vrot.slane %v196_v11, %v641_v27  ;;  %v173_v18 = vld [vmem:[#allocation6 + $0x3e0] sm:$0xff]  ;;  %v175_v19 = vld [vmem:[#allocation6 + $0x3f0] sm:$0xff]  ;;  %v166_v20 = vld [vmem:[#allocation6 + $0x3a8] sm:$0xff]  ;;  %v211_v22 = vcombine.high %v654_v16, %v654_v16 }
  0x32   :  { %v168_v21 = vld [vmem:[#allocation6 + $0x3b8] sm:$0xff]  ;;  %v165_v24 = vld [vmem:[#allocation6 + $0x3a0] sm:$0xff]  ;;  %v167_v25 = vld [vmem:[#allocation6 + $0x3b0] sm:$0xff] }
  0x33   :  { %v212_v23 = vcombine.high %v657_v17, %v657_v17  ;;  %v158_v26 = vld [vmem:[#allocation6 + $0x368] sm:$0xff]  ;;  %v160_v27 = vld [vmem:[#allocation6 + $0x378] sm:$0xff]  ;;  %v157_v28 = vld [vmem:[#allocation6 + $0x360] sm:$0xff] }
  0x34   :  { %234 = vmatpush1.xpose.msra.mxu0 %v121_v35  ;;  %304 = vmatpush1.xpose.msra.mxu1 %v123_v36  ;;  %v159_v29 = vld [vmem:[#allocation6 + $0x370] sm:$0xff]  ;;  %v150_v30 = vld [vmem:[#allocation6 + $0x328] sm:$0xff]  ;;  %v152_v31 = vld [vmem:[#allocation6 + $0x338] sm:$0xff] }
  0x35   :  { %235 = vmatprep.subr.mxu0 %v114_v37  ;;  %305 = vmatprep.subr.mxu1 %v116_v38  ;;  %v149_v32 = vld [vmem:[#allocation6 + $0x320] sm:$0xff]  ;;  %v142_v34 = vld [vmem:[#allocation6 + $0x2e8] sm:$0xff]  ;;  %v144_v35 = vld [vmem:[#allocation6 + $0x2f8] sm:$0xff] }
  0x36   :  { %v141_v36 = vld [vmem:[#allocation6 + $0x2e0] sm:$0xff]  ;;  %v143_v37 = vld [vmem:[#allocation6 + $0x2f0] sm:$0xff]  ;;  %v134_v38 = vld [vmem:[#allocation6 + $0x2a8] sm:$0xff] }
  0x37   :  { %v136_v39 = vld [vmem:[#allocation6 + $0x2b8] sm:$0xff]  ;;  %v135_v41 = vld [vmem:[#allocation6 + $0x2b0] sm:$0xff]  ;;  %v70_v6 = vld [vmem:[#allocation6 + $0xa8] sm:$0xff] }
  0x38   :  { %236 = vmatpush1.xpose.msra.mxu0 %v113_v42  ;;  %306 = vmatpush1.xpose.msra.mxu1 %v115_v43  ;;  %v126_v42 = vld [vmem:[#allocation6 + $0x268] sm:$0xff]  ;;  %v128_v43 = vld [vmem:[#allocation6 + $0x278] sm:$0xff] }
  0x39   :  { %237 = vmatprep.subr.mxu0 %v106_v44  ;;  %307 = vmatprep.subr.mxu1 %v108_v45  ;;  %v125_v44 = vld [vmem:[#allocation6 + $0x260] sm:$0xff]  ;;  %v127_v45 = vld [vmem:[#allocation6 + $0x270] sm:$0xff]  ;;  %v64_v11 = vld [vmem:[#allocation6 + $0x78] sm:$0xff] }
  0x3c   :  { %238 = vmatpush1.xpose.msra.mxu0 %v105_v46  ;;  %308 = vmatpush1.xpose.msra.mxu1 %v107_v47  ;;  %v118_v46 = vld [vmem:[#allocation6 + $0x228] sm:$0xff]  ;;  %v120_v47 = vld [vmem:[#allocation6 + $0x238] sm:$0xff] }
  0x3d   :  { %239 = vmatprep.subr.mxu0 %v98_v48  ;;  %309 = vmatprep.subr.mxu1 %v100_v49  ;;  %v117_v48 = vld [vmem:[#allocation6 + $0x220] sm:$0xff]  ;;  %v119_v49 = vld [vmem:[#allocation6 + $0x230] sm:$0xff] }
  0x40   :  { %240 = vmatpush1.xpose.msra.mxu0 %v97_v50  ;;  %310 = vmatpush1.xpose.msra.mxu1 %v99_v51  ;;  %v110_v50 = vld [vmem:[#allocation6 + $0x1e8] sm:$0xff]  ;;  %v112_v51 = vld [vmem:[#allocation6 + $0x1f8] sm:$0xff] }
  0x41   :  { %241 = vmatprep.subr.mxu0 %v90_v52  ;;  %311 = vmatprep.subr.mxu1 %v92_v53  ;;  %v109_v52 = vld [vmem:[#allocation6 + $0x1e0] sm:$0xff]  ;;  %v111_v53 = vld [vmem:[#allocation6 + $0x1f0] sm:$0xff] }
  0x44   :  { %242 = vmatpush1.xpose.msra.mxu0 %v89_v54  ;;  %312 = vmatpush1.xpose.msra.mxu1 %v91_v55  ;;  %v102_v54 = vld [vmem:[#allocation6 + $0x1a8] sm:$0xff]  ;;  %v104_v55 = vld [vmem:[#allocation6 + $0x1b8] sm:$0xff] }
  0x45   :  { %243 = vmatprep.subr.mxu0 %v82_v56  ;;  %313 = vmatprep.subr.mxu1 %v84_v57  ;;  %v101_v56 = vld [vmem:[#allocation6 + $0x1a0] sm:$0xff]  ;;  %v103_v57 = vld [vmem:[#allocation6 + $0x1b0] sm:$0xff] }
  0x48   :  { %244 = vmatpush1.xpose.msra.mxu0 %v81_v58  ;;  %314 = vmatpush1.xpose.msra.mxu1 %v83_v59  ;;  %v94_v58 = vld [vmem:[#allocation6 + $0x168] sm:$0xff]  ;;  %v96_v59 = vld [vmem:[#allocation6 + $0x178] sm:$0xff] }
  0x49   :  { %245 = vmatprep.subr.mxu0 %v74_v60  ;;  %315 = vmatprep.subr.mxu1 %v76_v61  ;;  %v93_v60 = vld [vmem:[#allocation6 + $0x160] sm:$0xff]  ;;  %v95_v61 = vld [vmem:[#allocation6 + $0x170] sm:$0xff] }
  0x4c   :  { %246 = vmatpush1.xpose.msra.mxu0 %v73_v62  ;;  %316 = vmatpush1.xpose.msra.mxu1 %v75_v63  ;;  %v86_v62 = vld [vmem:[#allocation6 + $0x128] sm:$0xff]  ;;  %v88_v63 = vld [vmem:[#allocation6 + $0x138] sm:$0xff] }
  0x4d   :  { %247 = vmatprep.subr.mxu0 %v66_v0  ;;  %317 = vmatprep.subr.mxu1 %v68_v1  ;;  %v85_v0 = vld [vmem:[#allocation6 + $0x120] sm:$0xff]  ;;  %v87_v1 = vld [vmem:[#allocation6 + $0x130] sm:$0xff] }
  0x50   :  { %248 = vmatpush1.xpose.msra.mxu0 %v65_v2  ;;  %318 = vmatpush1.xpose.msra.mxu1 %v67_v3  ;;  %v78_v2 = vld [vmem:[#allocation6 + $0xe8] sm:$0xff]  ;;  %v80_v3 = vld [vmem:[#allocation6 + $0xf8] sm:$0xff] }
  0x51   :  { %249 = vmatprep.subr.mxu0 %v58_v4  ;;  %319 = vmatprep.subr.mxu1 %v60_v5  ;;  %v77_v4 = vld [vmem:[#allocation6 + $0xe0] sm:$0xff]  ;;  %v79_v5 = vld [vmem:[#allocation6 + $0xf0] sm:$0xff] }
  0x54   :  { %250 = vmatpush1.xpose.msra.mxu0 %v57_v7  ;;  %320 = vmatpush1.xpose.msra.mxu1 %v59_v8  ;;  %v72_v7 = vld [vmem:[#allocation6 + $0xb8] sm:$0xff]  ;;  %v69_v8 = vld [vmem:[#allocation6 + $0xa0] sm:$0xff] }
  0x55   :  { %251 = vmatprep.subr.mxu0 %v50_v9  ;;  %321 = vmatprep.subr.mxu1 %v52_v10  ;;  %v71_v9 = vld [vmem:[#allocation6 + $0xb0] sm:$0xff]  ;;  %v62_v10 = vld [vmem:[#allocation6 + $0x68] sm:$0xff] }
  0x58   :  { %252 = vmatpush1.xpose.msra.mxu0 %v49_v12  ;;  %322 = vmatpush1.xpose.msra.mxu1 %v51_v13  ;;  %v61_v12 = vld [vmem:[#allocation6 + $0x60] sm:$0xff]  ;;  %v63_v13 = vld [vmem:[#allocation6 + $0x70] sm:$0xff] }
  0x59   :  { %361 = vmatprep.subr.mxu0 %v174_v14  ;;  %431 = vmatprep.subr.mxu1 %v176_v15  ;;  %v54_v14 = vld [vmem:[#allocation6 + $0x28] sm:$0xff]  ;;  %v56_v15 = vld [vmem:[#allocation6 + $0x38] sm:$0xff] }
  0x5b   :  { %286 = vmatmul.mubr.f32.vlgmr.msra.gmra.mxu0 %v644_v33  ;;  %356 = vmatmul.mubr.f32.vlgmr.msra.gmra.mxu1 %v649_v40  ;;  %v151_v33 = vld [vmem:[#allocation6 + $0x330] sm:$0xff]  ;;  %v133_v40 = vld [vmem:[#allocation6 + $0x2a0] sm:$0xff] }
  0x5c   :  { %362 = vmatpush1.xpose.msra.mxu0 %v173_v18  ;;  %432 = vmatpush1.xpose.msra.mxu1 %v175_v19  ;;  %v53_v18 = vld [vmem:[#allocation6 + $0x20] sm:$0xff]  ;;  %v55_v19 = vld [vmem:[#allocation6 + $0x30] sm:$0xff] }
  0x5d   :  { %363 = vmatprep.subr.mxu0 %v166_v20  ;;  %433 = vmatprep.subr.mxu1 %v168_v21  ;;  %v613_v20 = vmov 0.0  }
  0x5e   :  { %425 = vmatprep.mubr.f32.mxu0 %v211_v22  ;;  %495 = vmatprep.mubr.f32.mxu1 %v212_v23  ;;  %45 = vst [vmem:[#allocation2] sm:$0x3] %v613_v20 }
  0x60   :  { %364 = vmatpush1.xpose.msra.mxu0 %v165_v24  ;;  %434 = vmatpush1.xpose.msra.mxu1 %v167_v25 }
  0x61   :  { %365 = vmatprep.subr.mxu0 %v158_v26  ;;  %435 = vmatprep.subr.mxu1 %v160_v27 }
  0x64   :  { %366 = vmatpush1.xpose.msra.mxu0 %v157_v28  ;;  %436 = vmatpush1.xpose.msra.mxu1 %v159_v29 }
  0x65   :  { %367 = vmatprep.subr.mxu0 %v150_v30  ;;  %437 = vmatprep.subr.mxu1 %v152_v31  ;;  %v46_v29 = vld [vmem:[#allocation2] sm:$0x3] }
  0x68   :  { %368 = vmatpush1.xpose.msra.mxu0 %v149_v32  ;;  %438 = vmatpush1.xpose.msra.mxu1 %v151_v33 }
  0x69   :  { %369 = vmatprep.subr.mxu0 %v142_v34  ;;  %439 = vmatprep.subr.mxu1 %v144_v35 }
  0x6c   :  { %370 = vmatpush1.xpose.msra.mxu0 %v141_v36  ;;  %440 = vmatpush1.xpose.msra.mxu1 %v143_v37 }
  0x6d   :  { %371 = vmatprep.subr.mxu0 %v134_v38  ;;  %441 = vmatprep.subr.mxu1 %v136_v39 }
  0x70   :  { %372 = vmatpush1.xpose.msra.mxu0 %v133_v40  ;;  %442 = vmatpush1.xpose.msra.mxu1 %v135_v41 }
  0x71   :  { %373 = vmatprep.subr.mxu0 %v126_v42  ;;  %443 = vmatprep.subr.mxu1 %v128_v43 }
  0x74   :  { %374 = vmatpush1.xpose.msra.mxu0 %v125_v44  ;;  %444 = vmatpush1.xpose.msra.mxu1 %v127_v45 }
  0x75   :  { %375 = vmatprep.subr.mxu0 %v118_v46  ;;  %445 = vmatprep.subr.mxu1 %v120_v47 }
  0x78   :  { %376 = vmatpush1.xpose.msra.mxu0 %v117_v48  ;;  %446 = vmatpush1.xpose.msra.mxu1 %v119_v49 }
  0x79   :  { %377 = vmatprep.subr.mxu0 %v110_v50  ;;  %447 = vmatprep.subr.mxu1 %v112_v51 }
  0x7c   :  { %378 = vmatpush1.xpose.msra.mxu0 %v109_v52  ;;  %448 = vmatpush1.xpose.msra.mxu1 %v111_v53 }
  0x7d   :  { %379 = vmatprep.subr.mxu0 %v102_v54  ;;  %449 = vmatprep.subr.mxu1 %v104_v55 }
  0x80   :  { %380 = vmatpush1.xpose.msra.mxu0 %v101_v56  ;;  %450 = vmatpush1.xpose.msra.mxu1 %v103_v57 }
  0x81   :  { %381 = vmatprep.subr.mxu0 %v94_v58  ;;  %451 = vmatprep.subr.mxu1 %v96_v59 }
  0x84   :  { %382 = vmatpush1.xpose.msra.mxu0 %v93_v60  ;;  %452 = vmatpush1.xpose.msra.mxu1 %v95_v61 }
  0x85   :  { %383 = vmatprep.subr.mxu0 %v86_v62  ;;  %453 = vmatprep.subr.mxu1 %v88_v63 }
  0x88   :  { %384 = vmatpush1.xpose.msra.mxu0 %v85_v0  ;;  %454 = vmatpush1.xpose.msra.mxu1 %v87_v1 }
  0x89   :  { %385 = vmatprep.subr.mxu0 %v78_v2  ;;  %455 = vmatprep.subr.mxu1 %v80_v3 }
  0x8c   :  { %386 = vmatpush1.xpose.msra.mxu0 %v77_v4  ;;  %456 = vmatpush1.xpose.msra.mxu1 %v79_v5 }
  0x8d   :  { %387 = vmatprep.subr.mxu0 %v70_v6  ;;  %457 = vmatprep.subr.mxu1 %v72_v7 }
  0x90   :  { %388 = vmatpush1.xpose.msra.mxu0 %v69_v8  ;;  %458 = vmatpush1.xpose.msra.mxu1 %v71_v9 }
  0x91   :  { %389 = vmatprep.subr.mxu0 %v62_v10  ;;  %459 = vmatprep.subr.mxu1 %v64_v11 }
  0x94   :  { %390 = vmatpush1.xpose.msra.mxu0 %v61_v12  ;;  %460 = vmatpush1.xpose.msra.mxu1 %v63_v13 }
  0x95   :  { %391 = vmatprep.subr.mxu0 %v54_v14  ;;  %461 = vmatprep.subr.mxu1 %v56_v15 }
  0x98   :  { %392 = vmatpush1.xpose.msra.mxu0 %v53_v18  ;;  %462 = vmatpush1.xpose.msra.mxu1 %v55_v19 }
  0x9b   :  { %426 = vmatmul.mubr.f32.vlgmr.msra.gmra.mxu0 %v654_v16  ;;  %496 = vmatmul.mubr.f32.vlgmr.msra.gmra.mxu1 %v657_v17  ;;  %v532_v16 = vld [vmem:[%s675_s2] ss:$0 sm:$0xff] }
 0x11b   :  { %v287_v21 = vpop.f32.mrf.mxu0  ;;  %v357_v22 = vpop.f32.mrf.mxu1 }
 0x11c   :  { %v358_v25 = vadd.f32 %v357_v22, %v287_v21 }
 0x11d   :  { %v289_v23 = vpop.f32.mrf.mxu0  ;;  %v359_v24 = vpop.f32.mrf.mxu1 }
 0x15b   :  { %v427_v26 = vpop.f32.mrf.mxu0  ;;  %v497_v27 = vpop.f32.mrf.mxu1 }
 0x15c   :  { %v428_v28 = vadd.f32 %v427_v26, %v358_v25 }
 0x15d   :  { %v429_v30 = vpop.f32.mrf.mxu0  ;;  %v499_v31 = vpop.f32.mrf.mxu1 }
 0x15e   :  { %v498_v32 = vadd.f32 %v497_v27, %v428_v28 }
 0x160   :  { %v501_v33 = vadd.f32 %v498_v32, %v46_v29 }
 0x162   :  { %502 = vst [vmem:[#allocation2] sm:$0x3] %v501_v33 }
 0x169   :  { %v506_v17 = vld [vmem:[#allocation2] sm:$0x3] }
 0x16a   :  { %v514_v34 = vadd.f32 %v532_v16, %v506_v17 }
 0x16c   :  { %515 = vst [vmem:[#allocation8] sm:$0x3] %v514_v34 }
 0x16d   :  { %593 = shalt.err (!%p590_p0)
}
 0x16e   :  { %525 = dma.vmem_to_hbm [thread:$0]  %s523_s25, 32, %s676_s3, [#allocation5]  }
 0x16f   :  { %606 = dma.done.wait [#allocation5], 32  }
 0x170   :  { %607 = vsyncadd [#allocation5], 4294967264 }
 0x171   :  { %529 = vsyncpa [#allocation4], 1 }
 0x172   :  { %530 = vsyncpa [#allocation7], 1 }
 0x173   :  { %531 = vsyncpa [#allocation5], 1 }

</bundles_post_ra>
